<compile_context>
chip_gen: v7x
topology: tpu7x:2x2x1
jax: 0.10.0
libtpu: 0.0.40
codegen_flags: <defaults>
</compile_context>

<pallas_src>
import functools

import jax
import jax.numpy as jnp
from jax.experimental import pallas as pl
from jax.experimental.pallas import tpu as pltpu


_TARGET_BLOCK_BYTES = 12 * 1024 * 1024   # per input buffer (~12 MiB); x2 double-buffered


def _round_up(v, m):
    return ((v + m - 1) // m) * m


def _sublane_gran(dtype):
    # 8 rows/sublane-tile for 4-byte dtypes, 16 for bf16, 32 for int8/fp8.
    return max(8, 32 // jnp.dtype(dtype).itemsize)


# ----------------------------- Kernel 1a: row-tiled fused avg+max pooling -----------------------------
def _pool_rows_kernel(x_ref, avg_ref, max_ref, *, inv_hw):
    x = x_ref[...]                                            # (block_rows, H*W), native dtype
    s = jnp.sum(x, axis=-1, dtype=jnp.float32)                # f32 accumulation, no full-block upcast
    m = jnp.max(x, axis=-1)                                   # native dtype, cast only the per-row result
    avg_ref[...] = (s * inv_hw).reshape(avg_ref.shape)        # lane-dense (1, 1, block_rows) store
    max_ref[...] = m.astype(jnp.float32).reshape(max_ref.shape)


# ----------------------------- Kernel 1b: column-tiled reduction (huge H*W) -----------------------------
def _pool_cols_kernel(x_ref, avg_ref, max_ref, *, inv_hw, cols, block_cols, needs_mask):
    k = pl.program_id(1)

    @pl.when(k == 0)
    def _init():
        avg_ref[...] = jnp.zeros_like(avg_ref)
        max_ref[...] = jnp.full_like(max_ref, -jnp.inf)

    x = x_ref[...]                                            # (block_rows, block_cols)
    if needs_mask:
        col = jax.lax.broadcasted_iota(jnp.int32, x.shape, 1) + k * block_cols
        valid = col < cols
        xf = x.astype(jnp.float32)
        s = jnp.sum(jnp.where(valid, xf, 0.0), axis=-1)
        m = jnp.max(jnp.where(valid, xf, -jnp.inf), axis=-1)
    else:
        s = jnp.sum(x, axis=-1, dtype=jnp.float32)
        m = jnp.max(x, axis=-1).astype(jnp.float32)

    avg_ref[...] += s.reshape(avg_ref.shape)
    max_ref[...] = jnp.maximum(max_ref[...], m.reshape(max_ref.shape))

    @pl.when(k == pl.num_programs(1) - 1)
    def _fin():
        avg_ref[...] *= inv_hw


def _global_avg_max_pool(x2, *, target_block_bytes=_TARGET_BLOCK_BYTES):
    """x2: (rows, cols) = (N*C, H*W) -> (avg, max), each (rows,) float32."""
    rows, cols = x2.shape
    itemsize = x2.dtype.itemsize
    gran = _sublane_gran(x2.dtype)
    bytes_per_row = cols * itemsize
    inv_hw = 1.0 / float(cols)

    if gran * bytes_per_row <= target_block_bytes:
        # ---------- row-tiled path (common case): whole H*W per row fits one block ----------
        row_budget = max(gran, (target_block_bytes // bytes_per_row) // gran * gran)
        block_rows = min(row_budget, _round_up(rows, gran))
        if rows <= row_budget and rows >= 2 * gran:
            # Whole problem fits one block: split into up to 4 tiles so the "parallel"
            # grid axis has work for both v7x TensorCores.
            ntiles = min(4, rows // gran)
            block_rows = _round_up(pl.cdiv(rows, ntiles), gran)
        grid_rows = pl.cdiv(rows, block_rows)

        grid = (grid_rows,)
        in_specs = [pl.BlockSpec((block_rows, cols), lambda i: (i, 0))]
        out_spec = pl.BlockSpec((1, 1, block_rows), lambda i: (i, 0, 0))
        kernel = functools.partial(_pool_rows_kernel, inv_hw=inv_hw)
        semantics = ("parallel",)
        block_bytes = block_rows * bytes_per_row
    else:
        # ---------- column-tiled reduction path (huge H*W): reduction axis last, "arbitrary" ----------
        block_rows = gran
        block_cols = max(128, (target_block_bytes // (gran * itemsize)) // 128 * 128)
        block_cols = min(block_cols, _round_up(cols, 128))
        grid_rows = pl.cdiv(rows, block_rows)
        grid_cols = pl.cdiv(cols, block_cols)

        grid = (grid_rows, grid_cols)
        in_specs = [pl.BlockSpec((block_rows, block_cols), lambda i, k: (i, k))]
        out_spec = pl.BlockSpec((1, 1, block_rows), lambda i, k: (i, 0, 0))
        kernel = functools.partial(
            _pool_cols_kernel, inv_hw=inv_hw, cols=cols, block_cols=block_cols,
            needs_mask=(cols % block_cols != 0))
        semantics = ("parallel", "arbitrary")
        block_bytes = block_rows * block_cols * itemsize

    # lane-dense outputs: each grid step writes one (1, 1, block_rows) slab
    out_shapes = (jax.ShapeDtypeStruct((grid_rows, 1, block_rows), jnp.float32),) * 2

    # generation-aware VMEM budget: 2x double-buffered input + slack; always <= 56 MiB
    # (safe inside v7x's 64 MiB physical VMEM, raises v5e's 16 MiB default scoped limit).
    vmem_limit = min(56 * 1024 * 1024,
                     max(32 * 1024 * 1024, 2 * block_bytes + 4 * 1024 * 1024))

    avg3, max3 = pl.pallas_call(
        kernel,
        out_shape=out_shapes,
        grid_spec=pl.GridSpec(grid=grid, in_specs=in_specs, out_specs=(out_spec, out_spec)),
        compiler_params=pltpu.CompilerParams(
            dimension_semantics=semantics,
            vmem_limit_bytes=vmem_limit),
        cost_estimate=pl.CostEstimate(
            flops=2 * rows * cols,
            transcendentals=0,
            bytes_accessed=rows * cols * itemsize + 2 * rows * 4),
    )(x2)

    avg = avg3.reshape(-1)[:rows]
    mx = max3.reshape(-1)[:rows]
    return avg, mx


# ----------------------------- Module forward -----------------------------
def channel_attention(x, w1, w2):
    """ChannelAttentionModule forward. x: (N, C, H, W); w1: (C, C//r); w2: (C//r, C).
    Returns the attention map, shape (N, C, 1, 1) (matches the PyTorch module's forward)."""
    n, c, h, w = x.shape
    rows, cols = n * c, h * w
    x2 = x.reshape(rows, cols)                                # lane axis = H*W (layout plumbing)

    avg, mx = _global_avg_max_pool(x2)
    avg = avg.reshape(n, c)
    mx = mx.reshape(n, c)

    # Tiny shared MLP + sigmoid: plain XLA per the perf review — a second pallas_call is pure
    # dispatch/DMA overhead at (N, C) sizes. Stack avg & max so shared weights run once.
    v = jnp.concatenate([avg, mx], axis=0)                    # (2N, C) float32
    hdn = jnp.maximum(v @ w1.astype(jnp.float32), 0.0)        # (2N, C//r)
    s = hdn @ w2.astype(jnp.float32)                          # (2N, C)
    gate = jax.nn.sigmoid(s[:n] + s[n:])
    return gate.astype(x.dtype).reshape(n, c, 1, 1)


# ----------------------------- Pure-JAX reference -----------------------------
def channel_attention_ref(x, w1, w2):
    xf = x.astype(jnp.float32)
    avg = jnp.mean(xf, axis=(2, 3))                           # (N, C)
    mx = jnp.max(xf, axis=(2, 3))                             # (N, C)

    def mlp(v):
        return jnp.maximum(v @ w1.astype(jnp.float32), 0.0) @ w2.astype(jnp.float32)

    s = mlp(avg) + mlp(mx)
    return jax.nn.sigmoid(s).astype(x.dtype).reshape(x.shape[0], x.shape[1], 1, 1)


if __name__ == "__main__":
    key = jax.random.PRNGKey(0)
    k1, k2, k3 = jax.random.split(key, 3)

    N, C, H, W = 2, 64, 16, 16          # channel must be >= ratio for a nonzero bottleneck
    ratio = 16
    hidden = C // ratio

    x = jax.random.normal(k1, (N, C, H, W), dtype=jnp.float32)
    w1 = jax.random.normal(k2, (C, hidden), dtype=jnp.float32) * 0.1   # Conv2d(C, C//r, 1).weight^T
    w2 = jax.random.normal(k3, (hidden, C), dtype=jnp.float32) * 0.1   # Conv2d(C//r, C, 1).weight^T

    fn = jax.jit(channel_attention)
    out = fn(x, w1, w2)
    jax.block_until_ready(out)

    ref = channel_attention_ref(x, w1, w2)
    assert out.shape == (N, C, 1, 1) and out.dtype == x.dtype
    assert jnp.allclose(out, ref, atol=1e-5, rtol=1e-5), "mismatch vs reference (row-tiled path)"

    # Also exercise the column-tiled reduction path (forced small block budget) including the
    # masked ragged last column tile and non-multiple-of-8 row count.
    rows2, cols2 = 100, 225
    y = jax.random.normal(k1, (rows2, cols2), dtype=jnp.float32)
    avg_k, max_k = _global_avg_max_pool(y, target_block_bytes=4096)
    jax.block_until_ready(avg_k)
    assert jnp.allclose(avg_k, jnp.mean(y, axis=-1), atol=1e-5, rtol=1e-5), "col-path avg mismatch"
    assert jnp.allclose(max_k, jnp.max(y, axis=-1), atol=1e-6, rtol=1e-6), "col-path max mismatch"

    print("KERNEL_OK")
</pallas_src>

<mosaic_0001>
module attributes {stable_mosaic.version = 11 : i64} {
  func.func @_pool_rows_kernel(%arg0: i32, %arg1: memref<32x256xf32, #tpu.memory_space<vmem>>, %arg2: memref<1x1x32xf32, #tpu.memory_space<vmem>>, %arg3: memref<1x1x32xf32, #tpu.memory_space<vmem>>) attributes {dimension_semantics = [#tpu.dimension_semantics<parallel>], iteration_bounds = array<i64: 4>, scalar_prefetch = 0 : i64, scratch_operands = 0 : i64, tpu.core_type = #tpu.core_type<tc>, window_params = [{transform_indices = @transform_0, window_bounds = array<i64: 32, 256>}, {transform_indices = @transform_1, window_bounds = array<i64: 1, 1, 32>}, {transform_indices = @transform_2, window_bounds = array<i64: 1, 1, 32>}]} {
    %c0 = arith.constant 0 : index
    %c0_0 = arith.constant 0 : index
    %0 = vector.load %arg1[%c0, %c0_0] : memref<32x256xf32, #tpu.memory_space<vmem>>, vector<32x256xf32>
    %cst = arith.constant dense<0.000000e+00> : vector<32xf32>
    %1 = vector.multi_reduction <add>, %0, %cst [1] : vector<32x256xf32> to vector<32xf32>
    %cst_1 = arith.constant dense<0xFF800000> : vector<32xf32>
    %2 = vector.multi_reduction <maximumf>, %0, %cst_1 [1] : vector<32x256xf32> to vector<32xf32>
    %cst_2 = arith.constant 3.906250e-03 : f32
    %3 = vector.broadcast %cst_2 : f32 to vector<32xf32>
    %4 = arith.mulf %1, %3 : vector<32xf32>
    %5 = vector.shape_cast %4 : vector<32xf32> to vector<1x1x32xf32>
    %c0_3 = arith.constant 0 : index
    %c0_4 = arith.constant 0 : index
    %c0_5 = arith.constant 0 : index
    %6 = vector.load %arg2[%c0_3, %c0_4, %c0_5] : memref<1x1x32xf32, #tpu.memory_space<vmem>>, vector<1x1x32xf32>
    tpu.vector_store %arg2[%c0_3, %c0_4, %c0_5], %5 {strides = array<i32>} : memref<1x1x32xf32, #tpu.memory_space<vmem>>, vector<1x1x32xf32>,
    %7 = vector.shape_cast %2 : vector<32xf32> to vector<1x1x32xf32>
    %c0_6 = arith.constant 0 : index
    %c0_7 = arith.constant 0 : index
    %c0_8 = arith.constant 0 : index
    %8 = vector.load %arg3[%c0_6, %c0_7, %c0_8] : memref<1x1x32xf32, #tpu.memory_space<vmem>>, vector<1x1x32xf32>
    tpu.vector_store %arg3[%c0_6, %c0_7, %c0_8], %7 {strides = array<i32>} : memref<1x1x32xf32, #tpu.memory_space<vmem>>, vector<1x1x32xf32>,
    return
  }
  func.func @transform_0(%arg0: i32) -> (i32, i32) {
    %c0_i32 = arith.constant 0 : i32
    %c0_i32_0 = arith.constant 0 : i32
    return %arg0, %c0_i32 : i32, i32
  }
  func.func @transform_1(%arg0: i32) -> (i32, i32, i32) {
    %c0_i32 = arith.constant 0 : i32
    %c0_i32_0 = arith.constant 0 : i32
    %c0_i32_1 = arith.constant 0 : i32
    return %arg0, %c0_i32, %c0_i32_0 : i32, i32, i32
  }
  func.func @transform_2(%arg0: i32) -> (i32, i32, i32) {
    %c0_i32 = arith.constant 0 : i32
    %c0_i32_0 = arith.constant 0 : i32
    %c0_i32_1 = arith.constant 0 : i32
    return %arg0, %c0_i32, %c0_i32_0 : i32, i32, i32
  }
}

</mosaic_0001>

<bundles_post_ra>
// kernel: channel_attention.1
= control target key start
LH: loop header
LB: loop body
LE: loop exit
PB: predicated region body
PF: predicated region fallthrough
CT: control target
= control target key end

     0   :  { %s363_s9 = smov 0   ;;  %s394_s0 = inlined_call_operand.vmem [shape: f32[128,256], index: 0, kind: input, shape index: {}]   ;;  %s395_s1 = inlined_call_operand.vmem [shape: f32[4,1,32], index: 1, kind: output, shape index: {0}]   ;;  %s396_s2 = inlined_call_operand.vmem [shape: f32[4,1,32], index: 2, kind: output, shape index: {1}]  }
   0x1 LB: > { %s369_s10 = sadd.s32 4294967295, %s346_s9   ;;  %p325_p0 = scmp.ge.s32.totalorder %s346_s9, 1  ;;  %s346_s9 = sphi %s363_s9, %s13_s9  }
   0x2   : > { %p117_p1 = scmp.lt.s32.totalorder %s346_s9, 5 }
   0x4   : > { %p118_p2 = pnand %p325_p0, %p117_p1 }
   0x5   : > { %s326_s11 = sshll.u32 (!%p118_p2), %s369_s10, 2  ;;  %v194_v16 = vlaneseq (!%p118_p2)  ;;  %p148_p4 = scmp.lt.s32.totalorder (!%p118_p2), %s369_s10, 3  ;;  %vm205_vm0 = vcmask (!%p118_p2), 130112   ;;  %vm212_vm1 = vcmask (!%p118_p2), 195712   ;;  %vm219_vm2 = vcmask (!%p118_p2), 261312  }
   0x6   : > { %121 = sbr.rel (%p118_p2) target bundleno = 179 (0xb3), region = 24  ;;  %p142_p3 = scmp.lt.s32.totalorder (!%p118_p2), %s326_s11, 15  ;;  %vm222_vm3 = vcmask (!%p118_p2), 253952  }
   0x7   : > { %v195_v17 = vand.u32 (!%p118_p2), 127, %v194_v16  ;;  %v197_v18 = vshrl.u32 (!%p118_p2), %v194_v16, 7 }
   0x9   : > { %v214_v20 = vadd.s32 (!%p118_p2), 4294967272, %v195_v17  ;;  %v200_v21 = vadd.s32 (!%p118_p2), 4294967288, %v195_v17  ;;  %v207_v22 = vadd.s32 (!%p118_p2), 4294967280, %v195_v17  ;;  %v198_v24 = vsub.s32 (!%p118_p2), %v195_v17, %v197_v18 }
   0xb   : > { %v217_v26 = vsub.s32 (!%p118_p2), %v214_v20, %v197_v18  ;;  %v203_v28 = vsub.s32 (!%p118_p2), %v200_v21, %v197_v18  ;;  %v210_v29 = vsub.s32 (!%p118_p2), %v207_v22, %v197_v18 }
   0xd   : > { %s398_s11 = smov (!%p142_p3, %s326_s11), 15  ;;  %s400_s10 = smov (!%p148_p4, %s369_s10), 3 }
   0xe   : > { %s331_s12 = sshll.u32 %s398_s11, 4  ;;  %s150_s18 = scalar_lea.vmem %s395_s1, %s400_s10 }
   0xf   : > { %s146_s15 = scalar_lea.vmem %s394_s0, %s331_s12  ;;  %s153_s21 = scalar_lea.vmem %s396_s2, %s400_s10 }
  0x10   : > { %v158_v0 = vld [vmem:[%s146_s15 + $0x20] sm:$0xff]  ;;  %v159_v1 = vld [vmem:[%s146_s15 + $0x28] sm:$0xff]  ;;  %v160_v5 = vld [vmem:[%s146_s15 + $0x30] sm:$0xff] }
  0x11   : > { %v154_v2 = vld [vmem:[%s146_s15] sm:$0xff]  ;;  %v168_v3 = vadd.f32 %v159_v1, %v158_v0  ;;  %v155_v4 = vld [vmem:[%s146_s15 + $0x8] sm:$0xff]  ;;  %v161_v6 = vld [vmem:[%s146_s15 + $0x38] sm:$0xff]  ;;  %v180_v15 = vmax.f32 %v158_v0, %v159_v1 }
  0x12   : > { %v162_v7 = vadd.f32 %v155_v4, %v154_v2  ;;  %v156_v8 = vld [vmem:[%s146_s15 + $0x10] sm:$0xff]  ;;  %v157_v9 = vld [vmem:[%s146_s15 + $0x18] sm:$0xff]  ;;  %v171_v10 = vadd.f32 %v161_v6, %v160_v5  ;;  %v174_v13 = vmax.f32 %v154_v2, %v155_v4  ;;  %v183_v14 = vmax.f32 %v160_v5, %v161_v6 }
  0x13   : > { %169 = vadd.xlane.f32.xlu1 %v168_v3  ;;  %v165_v11 = vadd.f32 %v157_v9, %v156_v8  ;;  %v177_v12 = vmax.f32 %v156_v8, %v157_v9 }
  0x14   : > { %163 = vadd.xlane.f32.xlu0 %v162_v7 }
  0x17   : > { %172 = vadd.xlane.f32.xlu1 %v171_v10 }
  0x18   : > { %166 = vadd.xlane.f32.xlu0 %v165_v11 }
  0x1b   : > { %178 = vmax.xlane.f32.xlu1 %v177_v12 }
  0x1c   : > { %175 = vmax.xlane.f32.xlu0 %v174_v13 }
  0x1f   : > { %184 = vmax.xlane.f32.xlu1 %v183_v14 }
  0x20   : > { %181 = vmax.xlane.f32.xlu0 %v180_v15 }
  0xa0   : > { %v170_v19 = vpop.xlane.xlu1 %169 }
  0xa1   : > { %v164_v23 = vpop.xlane.xlu0 %163  ;;  %v188_v30 = vmul.f32 0.00390625, %v170_v19 }
  0xa2   : > { %v186_v25 = vmul.f32 0.00390625, %v164_v23 }
  0xa3   : > { %v211_v38 = vrot.slane %v188_v30, %v210_v29 }
  0xa4   : > { %v173_v27 = vpop.xlane.xlu1 %172  ;;  %v199_v34 = vrot.slane %v186_v25, %v198_v24 }
  0xa5   : > { %v189_v31 = vmul.f32 0.00390625, %v173_v27  ;;  %v167_v32 = vpop.xlane.xlu0 %166 }
  0xa6   : > { %v187_v33 = vmul.f32 0.00390625, %v167_v32 }
  0xa7   : > { %v218_v35 = vrot.slane %v189_v31, %v217_v26 }
  0xa8   : > { %v204_v36 = vrot.slane %v187_v33, %v203_v28  ;;  %v179_v37 = vpop.xlane.xlu1 %178 }
  0xa9   : > { %v176_v39 = vpop.xlane.xlu0 %175  ;;  %v235_v41 = vrot.slane %v179_v37, %v203_v28 }
  0xaa   : > { %v206_v40 = vsel %vm205_vm0, %v204_v36, %v199_v34  ;;  %v231_v42 = vrot.slane %v176_v39, %v198_v24 }
  0xab   : > { %v213_v43 = vsel %vm212_vm1, %v211_v38, %v206_v40 }
  0xac   : > { %v185_v44 = vpop.xlane.xlu1 %184  ;;  %v220_v45 = vsel %vm219_vm2, %v218_v35, %v213_v43  ;;  %v236_v49 = vsel %vm205_vm0, %v235_v41, %v231_v42 }
  0xad   : > { %v182_v46 = vpop.xlane.xlu0 %181  ;;  %223 = vst.msk [vmem:[%s150_s18] sm:$0x1] %vm222_vm3, %v220_v45  ;;  %v245_v47 = vrot.slane %v185_v44, %v217_v26 }
  0xae   : > { %v240_v48 = vrot.slane %v182_v46, %v210_v29 }
  0xb0   : > { %v241_v50 = vsel %vm212_vm1, %v240_v48, %v236_v49 }
  0xb1   : > { %v246_v51 = vsel %vm219_vm2, %v245_v47, %v241_v50 }
  0xb2   : > { %248 = vst.msk [vmem:[%s153_s21] sm:$0x1] %vm222_vm3, %v246_v51 }
  0xb3 PF: > { %s13_s9 = sadd.s32 1, %s346_s9  }
  0xb4   : > { %p10_p5 = scmp.ge.s32.totalorder %s13_s9, 6  }
  0xb6   :  { %12 = sbr.rel (!%p10_p5) target bundleno = 1 (0x1), region = 66 }

</bundles_post_ra>
